<compile_context>
chip_gen: v7x
topology: tpu7x:2x2x1
jax: 0.10.0
libtpu: 0.0.40
codegen_flags: <defaults>
</compile_context>

<pallas_src>
import jax
import jax.numpy as jnp
from jax.experimental import pallas as pl
from jax.experimental.pallas import tpu as pltpu

_PAD = 128          # lane-dense width for every hidden layer / the logits
_NEG_BIG = -1e30    # "minus infinity" bias for padded action logits


def _qnet_kernel(x_ref,
                 w1_ref, b1_ref,
                 w2_ref, b2_ref,
                 w3_ref, b3_ref,
                 w4_ref, b4_ref,
                 o_ref):
    """Fused MLP forward on one batch tile: 3x (linear+relu) -> linear -> softmax."""
    h = x_ref[...].astype(jnp.float32)

    # Hidden layers; f32 accumulation on the MXU, lane-dense (128-wide) activations.
    for w_ref, b_ref in ((w1_ref, b1_ref), (w2_ref, b2_ref), (w3_ref, b3_ref)):
        h = jnp.dot(h, w_ref[...], preferred_element_type=jnp.float32) + b_ref[...]
        h = jnp.maximum(h, 0.0)

    # Output layer; padded action columns carry a -1e30 bias -> exp() == 0 exactly.
    logits = jnp.dot(h, w4_ref[...], preferred_element_type=jnp.float32) + b4_ref[...]

    # Numerically-stable, exactly-normalized softmax over the action axis.
    m = jnp.max(logits, axis=-1, keepdims=True)
    e = jnp.exp(logits - m)
    denom = jnp.sum(e, axis=-1, keepdims=True)
    probs = e / denom

    # Store only the real action columns (narrow, store-traffic-minimal output).
    n_act = o_ref.shape[-1]
    o_ref[...] = probs[:, :n_act].astype(o_ref.dtype)


def pack_qnetwork_params(params):
    """One-time packing: transpose weights to (in, out), zero-pad out-features to 128.

    params: list of (W, b) with W shape (out, in) -- PyTorch Linear convention.
    Returns a flat list [W1, b1, W2, b2, ...] of f32 arrays ready for the kernel.
    """
    packed = []
    n = len(params)
    for idx, (w, b) in enumerate(params):
        w = jnp.asarray(w, jnp.float32)
        b = jnp.asarray(b, jnp.float32)
        out_f, in_f = w.shape
        in_pad = in_f if idx == 0 else _PAD       # hidden inputs already padded to 128
        w_p = jnp.zeros((in_pad, _PAD), jnp.float32).at[:in_f, :out_f].set(w.T)
        if idx == n - 1:
            # Padded action logits must never win the softmax.
            b_p = jnp.full((1, _PAD), _NEG_BIG, jnp.float32).at[0, :out_f].set(b)
        else:
            # Zero bias + zero weight cols -> padded hidden lanes stay exactly 0.
            b_p = jnp.zeros((1, _PAD), jnp.float32).at[0, :out_f].set(b)
        packed.append(w_p)
        packed.append(b_p)
    return packed


def _round_up(x, m):
    return ((x + m - 1) // m) * m


def qnetwork_forward(state, packed_params, action_size, *,
                     tile_b=4096, out_dtype=jnp.float32):
    """state: (B, state_size) f32 (or bf16 to halve the HBM read stream).

    packed_params: output of pack_qnetwork_params. Returns (B, action_size) probs.
    """
    B, S = state.shape

    # 8-aligned batch tile; for large B aim for >= 2 grid steps (v7x megacore),
    # capped at tile_b to keep VMEM (lane-padded input + f32 temporaries) bounded.
    tb = min(tile_b, _round_up(pl.cdiv(B, 2), 8))
    if tb >= B:
        tb = B                      # single full block; block dims == array dims
    grid = (pl.cdiv(B, tb),)        # ragged tail handled by Pallas (masked store)

    in_specs = [pl.BlockSpec((tb, S), lambda i: (i, 0))]
    for p in packed_params:         # weights/biases are grid-resident (constant map)
        in_specs.append(pl.BlockSpec(p.shape, lambda i: (0, 0)))
    out_spec = pl.BlockSpec((tb, action_size), lambda i: (i, 0))

    return pl.pallas_call(
        _qnet_kernel,
        out_shape=jax.ShapeDtypeStruct((B, action_size), out_dtype),
        grid=grid,
        in_specs=in_specs,
        out_specs=out_spec,
        compiler_params=pltpu.CompilerParams(dimension_semantics=("parallel",)),
    )(state, *packed_params)


def init_qnetwork_params(key, state_size, action_size, hidden_layer_neurons=(32, 16, 8)):
    """Deterministic init mirroring torch.nn.Linear default U(-1/sqrt(fan_in), +1/sqrt(fan_in))."""
    inputs = [state_size] + list(hidden_layer_neurons)
    outputs = list(hidden_layer_neurons) + [action_size]
    params = []
    for inp, outp in zip(inputs, outputs):
        key, kw, kb = jax.random.split(key, 3)
        bound = 1.0 / jnp.sqrt(jnp.float32(inp))
        w = jax.random.uniform(kw, (outp, inp), jnp.float32, -bound, bound)
        b = jax.random.uniform(kb, (outp,), jnp.float32, -bound, bound)
        params.append((w, b))
    return params


def qnetwork_reference(state, params):
    """Pure-JAX reference of the PyTorch forward."""
    x = jnp.asarray(state, jnp.float32)
    for w, b in params[:-1]:
        x = jax.nn.relu(x @ w.T + b)
    w, b = params[-1]
    return jax.nn.softmax(x @ w.T + b, axis=1)


if __name__ == "__main__":
    key = jax.random.PRNGKey(0)
    batch, state_size, action_size = 2, 8, 4
    hidden = (32, 16, 8)

    k_params, k_state = jax.random.split(key)
    params = init_qnetwork_params(k_params, state_size, action_size, hidden)
    state = jax.random.normal(k_state, (batch, state_size), jnp.float32)

    packed = pack_qnetwork_params(params)          # one-time packing, outside forward

    out = jax.block_until_ready(qnetwork_forward(state, packed, action_size))
    ref = qnetwork_reference(state, params)
    assert out.shape == (batch, action_size)
    assert jnp.allclose(jnp.sum(out, axis=1), 1.0, atol=1e-5)   # exact normalization
    assert jnp.allclose(out, ref, atol=1e-4, rtol=1e-4)

    # Larger ragged batch -> multi-step grid; partial tail block masked on store.
    big_state = jax.random.normal(jax.random.PRNGKey(1), (2051, state_size), jnp.float32)
    out_big = jax.block_until_ready(
        qnetwork_forward(big_state, packed, action_size, tile_b=1024))
    ref_big = qnetwork_reference(big_state, params)
    assert out_big.shape == (2051, action_size)
    assert jnp.allclose(jnp.sum(out_big, axis=1), 1.0, atol=1e-5)
    assert jnp.allclose(out_big, ref_big, atol=1e-4, rtol=1e-4)

    # bf16 state stream (halves the dominant HBM read on v6e/v7x); math stays f32.
    out_bf16 = jax.block_until_ready(
        qnetwork_forward(state.astype(jnp.bfloat16), packed, action_size))
    assert jnp.allclose(out_bf16, ref, atol=5e-2, rtol=5e-2)

    print("KERNEL_OK")
</pallas_src>

<mosaic_0001>
module attributes {stable_mosaic.version = 11 : i64} {
  func.func @_qnet_kernel(%arg0: i32, %arg1: memref<2x8xf32, #tpu.memory_space<vmem>>, %arg2: memref<8x128xf32, #tpu.memory_space<vmem>>, %arg3: memref<1x128xf32, #tpu.memory_space<vmem>>, %arg4: memref<128x128xf32, #tpu.memory_space<vmem>>, %arg5: memref<1x128xf32, #tpu.memory_space<vmem>>, %arg6: memref<128x128xf32, #tpu.memory_space<vmem>>, %arg7: memref<1x128xf32, #tpu.memory_space<vmem>>, %arg8: memref<128x128xf32, #tpu.memory_space<vmem>>, %arg9: memref<1x128xf32, #tpu.memory_space<vmem>>, %arg10: memref<2x4xf32, #tpu.memory_space<vmem>>) attributes {dimension_semantics = [#tpu.dimension_semantics<parallel>], iteration_bounds = array<i64: 1>, scalar_prefetch = 0 : i64, scratch_operands = 0 : i64, tpu.core_type = #tpu.core_type<tc>, window_params = [{transform_indices = @transform_0, window_bounds = array<i64: 2, 8>}, {pipeline_mode = #tpu.pipeline_mode<synchronous>, transform_indices = @transform_1, window_bounds = array<i64: 8, 128>}, {pipeline_mode = #tpu.pipeline_mode<synchronous>, transform_indices = @transform_2, window_bounds = array<i64: 1, 128>}, {pipeline_mode = #tpu.pipeline_mode<synchronous>, transform_indices = @transform_3, window_bounds = array<i64: 128, 128>}, {pipeline_mode = #tpu.pipeline_mode<synchronous>, transform_indices = @transform_4, window_bounds = array<i64: 1, 128>}, {pipeline_mode = #tpu.pipeline_mode<synchronous>, transform_indices = @transform_5, window_bounds = array<i64: 128, 128>}, {pipeline_mode = #tpu.pipeline_mode<synchronous>, transform_indices = @transform_6, window_bounds = array<i64: 1, 128>}, {pipeline_mode = #tpu.pipeline_mode<synchronous>, transform_indices = @transform_7, window_bounds = array<i64: 128, 128>}, {pipeline_mode = #tpu.pipeline_mode<synchronous>, transform_indices = @transform_8, window_bounds = array<i64: 1, 128>}, {transform_indices = @transform_9, window_bounds = array<i64: 2, 4>}]} {
    %c0 = arith.constant 0 : index
    %c0_0 = arith.constant 0 : index
    %0 = vector.load %arg1[%c0, %c0_0] : memref<2x8xf32, #tpu.memory_space<vmem>>, vector<2x8xf32>
    %c0_1 = arith.constant 0 : index
    %c0_2 = arith.constant 0 : index
    %1 = vector.load %arg2[%c0_1, %c0_2] : memref<8x128xf32, #tpu.memory_space<vmem>>, vector<8x128xf32>
    %cst = arith.constant dense<0.000000e+00> : vector<2x128xf32>
    %2 = tpu.matmul %0, %1, %cst {dimension_numbers = #tpu.dot_dimension_numbers<[1], [0], [0], [1], [0, 0, 1, 1], [], []>} : vector<2x8xf32>, vector<8x128xf32>, vector<2x128xf32> -> vector<2x128xf32>
    %c0_3 = arith.constant 0 : index
    %c0_4 = arith.constant 0 : index
    %3 = vector.load %arg3[%c0_3, %c0_4] : memref<1x128xf32, #tpu.memory_space<vmem>>, vector<1x128xf32>
    %4 = vector.broadcast %3 : vector<1x128xf32> to vector<2x128xf32>
    %5 = arith.addf %2, %4 : vector<2x128xf32>
    %cst_5 = arith.constant 0.000000e+00 : f32
    %6 = vector.broadcast %cst_5 : f32 to vector<2x128xf32>
    %7 = arith.maximumf %5, %6 : vector<2x128xf32>
    %c0_6 = arith.constant 0 : index
    %c0_7 = arith.constant 0 : index
    %8 = vector.load %arg4[%c0_6, %c0_7] : memref<128x128xf32, #tpu.memory_space<vmem>>, vector<128x128xf32>
    %cst_8 = arith.constant dense<0.000000e+00> : vector<2x128xf32>
    %9 = tpu.matmul %7, %8, %cst_8 {dimension_numbers = #tpu.dot_dimension_numbers<[1], [0], [0], [1], [0, 0, 1, 1], [], []>} : vector<2x128xf32>, vector<128x128xf32>, vector<2x128xf32> -> vector<2x128xf32>
    %c0_9 = arith.constant 0 : index
    %c0_10 = arith.constant 0 : index
    %10 = vector.load %arg5[%c0_9, %c0_10] : memref<1x128xf32, #tpu.memory_space<vmem>>, vector<1x128xf32>
    %11 = vector.broadcast %10 : vector<1x128xf32> to vector<2x128xf32>
    %12 = arith.addf %9, %11 : vector<2x128xf32>
    %cst_11 = arith.constant 0.000000e+00 : f32
    %13 = vector.broadcast %cst_11 : f32 to vector<2x128xf32>
    %14 = arith.maximumf %12, %13 : vector<2x128xf32>
    %c0_12 = arith.constant 0 : index
    %c0_13 = arith.constant 0 : index
    %15 = vector.load %arg6[%c0_12, %c0_13] : memref<128x128xf32, #tpu.memory_space<vmem>>, vector<128x128xf32>
    %cst_14 = arith.constant dense<0.000000e+00> : vector<2x128xf32>
    %16 = tpu.matmul %14, %15, %cst_14 {dimension_numbers = #tpu.dot_dimension_numbers<[1], [0], [0], [1], [0, 0, 1, 1], [], []>} : vector<2x128xf32>, vector<128x128xf32>, vector<2x128xf32> -> vector<2x128xf32>
    %c0_15 = arith.constant 0 : index
    %c0_16 = arith.constant 0 : index
    %17 = vector.load %arg7[%c0_15, %c0_16] : memref<1x128xf32, #tpu.memory_space<vmem>>, vector<1x128xf32>
    %18 = vector.broadcast %17 : vector<1x128xf32> to vector<2x128xf32>
    %19 = arith.addf %16, %18 : vector<2x128xf32>
    %cst_17 = arith.constant 0.000000e+00 : f32
    %20 = vector.broadcast %cst_17 : f32 to vector<2x128xf32>
    %21 = arith.maximumf %19, %20 : vector<2x128xf32>
    %c0_18 = arith.constant 0 : index
    %c0_19 = arith.constant 0 : index
    %22 = vector.load %arg8[%c0_18, %c0_19] : memref<128x128xf32, #tpu.memory_space<vmem>>, vector<128x128xf32>
    %cst_20 = arith.constant dense<0.000000e+00> : vector<2x128xf32>
    %23 = tpu.matmul %21, %22, %cst_20 {dimension_numbers = #tpu.dot_dimension_numbers<[1], [0], [0], [1], [0, 0, 1, 1], [], []>} : vector<2x128xf32>, vector<128x128xf32>, vector<2x128xf32> -> vector<2x128xf32>
    %c0_21 = arith.constant 0 : index
    %c0_22 = arith.constant 0 : index
    %24 = vector.load %arg9[%c0_21, %c0_22] : memref<1x128xf32, #tpu.memory_space<vmem>>, vector<1x128xf32>
    %25 = vector.broadcast %24 : vector<1x128xf32> to vector<2x128xf32>
    %26 = arith.addf %23, %25 : vector<2x128xf32>
    %cst_23 = arith.constant dense<0xFF800000> : vector<2xf32>
    %27 = vector.multi_reduction <maximumf>, %26, %cst_23 [1] : vector<2x128xf32> to vector<2xf32>
    %28 = vector.shape_cast %27 : vector<2xf32> to vector<2x1xf32>
    %29 = vector.broadcast %28 : vector<2x1xf32> to vector<2x128xf32>
    %30 = arith.subf %26, %29 : vector<2x128xf32>
    %31 = math.exp %30 : vector<2x128xf32>
    %cst_24 = arith.constant dense<0.000000e+00> : vector<2xf32>
    %32 = vector.multi_reduction <add>, %31, %cst_24 [1] : vector<2x128xf32> to vector<2xf32>
    %33 = vector.shape_cast %32 : vector<2xf32> to vector<2x1xf32>
    %34 = vector.broadcast %33 : vector<2x1xf32> to vector<2x128xf32>
    %35 = arith.divf %31, %34 : vector<2x128xf32>
    %36 = vector.extract_strided_slice %35 {offsets = [0, 0], sizes = [2, 4], strides = [1, 1]} : vector<2x128xf32> to vector<2x4xf32>
    %c0_25 = arith.constant 0 : index
    %c0_26 = arith.constant 0 : index
    %37 = vector.load %arg10[%c0_25, %c0_26] : memref<2x4xf32, #tpu.memory_space<vmem>>, vector<2x4xf32>
    tpu.vector_store %arg10[%c0_25, %c0_26], %36 {strides = array<i32>} : memref<2x4xf32, #tpu.memory_space<vmem>>, vector<2x4xf32>,
    return
  }
  func.func @transform_0(%arg0: i32) -> (i32, i32) {
    %c0_i32 = arith.constant 0 : i32
    %c0_i32_0 = arith.constant 0 : i32
    return %arg0, %c0_i32 : i32, i32
  }
  func.func @transform_1(%arg0: i32) -> (i32, i32) {
    %c0_i32 = arith.constant 0 : i32
    %c0_i32_0 = arith.constant 0 : i32
    %c0_i32_1 = arith.constant 0 : i32
    return %c0_i32, %c0_i32_0 : i32, i32
  }
  func.func @transform_2(%arg0: i32) -> (i32, i32) {
    %c0_i32 = arith.constant 0 : i32
    %c0_i32_0 = arith.constant 0 : i32
    %c0_i32_1 = arith.constant 0 : i32
    return %c0_i32, %c0_i32_0 : i32, i32
  }
  func.func @transform_3(%arg0: i32) -> (i32, i32) {
    %c0_i32 = arith.constant 0 : i32
    %c0_i32_0 = arith.constant 0 : i32
    %c0_i32_1 = arith.constant 0 : i32
    return %c0_i32, %c0_i32_0 : i32, i32
  }
  func.func @transform_4(%arg0: i32) -> (i32, i32) {
    %c0_i32 = arith.constant 0 : i32
    %c0_i32_0 = arith.constant 0 : i32
    %c0_i32_1 = arith.constant 0 : i32
    return %c0_i32, %c0_i32_0 : i32, i32
  }
  func.func @transform_5(%arg0: i32) -> (i32, i32) {
    %c0_i32 = arith.constant 0 : i32
    %c0_i32_0 = arith.constant 0 : i32
    %c0_i32_1 = arith.constant 0 : i32
    return %c0_i32, %c0_i32_0 : i32, i32
  }
  func.func @transform_6(%arg0: i32) -> (i32, i32) {
    %c0_i32 = arith.constant 0 : i32
    %c0_i32_0 = arith.constant 0 : i32
    %c0_i32_1 = arith.constant 0 : i32
    return %c0_i32, %c0_i32_0 : i32, i32
  }
  func.func @transform_7(%arg0: i32) -> (i32, i32) {
    %c0_i32 = arith.constant 0 : i32
    %c0_i32_0 = arith.constant 0 : i32
    %c0_i32_1 = arith.constant 0 : i32
    return %c0_i32, %c0_i32_0 : i32, i32
  }
  func.func @transform_8(%arg0: i32) -> (i32, i32) {
    %c0_i32 = arith.constant 0 : i32
    %c0_i32_0 = arith.constant 0 : i32
    %c0_i32_1 = arith.constant 0 : i32
    return %c0_i32, %c0_i32_0 : i32, i32
  }
  func.func @transform_9(%arg0: i32) -> (i32, i32) {
    %c0_i32 = arith.constant 0 : i32
    %c0_i32_0 = arith.constant 0 : i32
    return %arg0, %c0_i32 : i32, i32
  }
}

</mosaic_0001>

<bundles_post_ra>
// kernel: tpu_custom_call.1
= control target key start
LH: loop header
LB: loop body
LE: loop exit
PB: predicated region body
PF: predicated region fallthrough
CT: control target
= control target key end

     0   :  { %14 = vsyncpa [#allocation3], 0  ;;  %s1075_s0 = inlined_call_operand.hbm [shape: f32[2,8], index: 0, kind: input, shape index: {}]   ;;  %s1076_s1 = inlined_call_operand.hbm [shape: f32[8,128], index: 1, kind: input, shape index: {}]   ;;  %s1077_s2 = inlined_call_operand.vmem [shape: f32[1,128], index: 2, kind: input, shape index: {}]   ;;  %s1078_s3 = inlined_call_operand.hbm [shape: f32[128,128], index: 3, kind: input, shape index: {}]   ;;  %s1079_s4 = inlined_call_operand.vmem [shape: f32[1,128], index: 4, kind: input, shape index: {}]   ;;  %s1080_s5 = inlined_call_operand.hbm [shape: f32[128,128], index: 5, kind: input, shape index: {}]   ;;  %s1081_s6 = inlined_call_operand.vmem [shape: f32[1,128], index: 6, kind: input, shape index: {}]   ;;  %s1082_s7 = inlined_call_operand.hbm [shape: f32[128,128], index: 7, kind: input, shape index: {}]   ;;  %s1083_s8 = inlined_call_operand.vmem [shape: f32[1,128], index: 8, kind: input, shape index: {}]   ;;  %s1084_s9 = inlined_call_operand.hbm [shape: f32[2,4], index: 9, kind: output, shape index: {}]  }
   0x1   :  { %15 = vsyncpa [#allocation6], 0 }
   0x2   :  { %16 = vsyncpa [#allocation9], 0 }
   0x3   :  { %17 = vsyncpa [#allocation4], 0  ;;  %s888_s30 = smov [#allocation5]   ;;  %s748_s13 = scalar_lea.hbm %s1076_s1, 128 }
   0x4   :  { %s34_s10 = sshll.u32 %s888_s30, 4  ;;  %p749_p0 = scmp.ne.s32.totalorder %s1076_s1, %s748_s13  ;;  %s35_s10 = int_to_ptr.vmem [resolvable:$true] %s34_s10 }
   0x5   :  { %p752_p1 = scmp.lt.u32.totalorder %s748_s13, %s1076_s1 }
   0x7   :  { %p754_p2 = pnand %p752_p1, %p749_p0 }
   0x9   :  { %757 = shalt.err (!%p754_p2)
}
   0xa   :  { %s758_s18 = scalar_lea.vmem %s35_s10, 128  ;;  %p763_p4 = scmp.lt.s32.totalorder %s35_s10, %s35_s10 }
   0xb   :  { %p759_p3 = scmp.ne.s32.totalorder %s35_s10, %s758_s18  ;;  %p764_p5 = scmp.lt.s32.totalorder %s758_s18, %s758_s18 }
   0xd   :  { %p765_p6 = por %p764_p5, %p763_p4 }
   0xf   :  { %p766_p7 = pnand %p765_p6, %p759_p3 }
  0x11   :  { %769 = shalt.err (!%p766_p7)
}
  0x12   :  { %37 = dma.hbm_to_vmem [thread:$0]  %s1076_s1, 128, %s35_s10, [#allocation6]  }
  0x13   :  { %s889_s21 = smov [#allocation8]   ;;  %s890_s23 = smov [#allocation2]  }
  0x14   :  { %s59_s22 = sshll.u32 %s889_s21, 4  ;;  %s24_s24 = sshll.u32 %s890_s23, 4  ;;  %s60_s22 = int_to_ptr.vmem [resolvable:$true] %s59_s22  ;;  %s25_s24 = int_to_ptr.vmem [resolvable:$true] %s24_s24 }
  0x15   :  { %s770_s27 = scalar_lea.hbm %s1080_s5, 2048 }
  0x16   :  { %p771_p8 = scmp.ne.s32.totalorder %s1080_s5, %s770_s27  ;;  %p774_p9 = scmp.lt.u32.totalorder %s770_s27, %s1080_s5 }
  0x18   :  { %p776_p10 = pnand %p774_p9, %p771_p8 }
  0x1a   :  { %779 = shalt.err (!%p776_p10)
}
  0x1b   :  { %s780_s1 = scalar_lea.vmem %s60_s22, 2048  ;;  %p785_p12 = scmp.lt.s32.totalorder %s60_s22, %s60_s22 }
  0x1c   :  { %p781_p11 = scmp.ne.s32.totalorder %s60_s22, %s780_s1  ;;  %p786_p13 = scmp.lt.s32.totalorder %s780_s1, %s780_s1 }
  0x1e   :  { %p787_p0 = por %p786_p13, %p785_p12 }
  0x20   :  { %p788_p1 = pnand %p787_p0, %p781_p11 }
  0x22   :  { %791 = shalt.err (!%p788_p1)
}
  0x23   :  { %s891_s10 = smov 128   ;;  %s892_s12 = smov 8  }
  0x24   :  { %65 = dma.hbm_to_vmem [thread:$0]  %s1080_s5, 2048, %s60_s22, [#allocation9], %s891_s10, %s891_s10, %s892_s12  }
  0x25   :  { %s792_s17 = scalar_lea.hbm %s1075_s0, 32 }
  0x26   :  { %p793_p2 = scmp.ne.s32.totalorder %s1075_s0, %s792_s17  ;;  %p796_p3 = scmp.lt.u32.totalorder %s792_s17, %s1075_s0 }
  0x28   :  { %p798_p4 = pnand %p796_p3, %p793_p2 }
  0x2a   :  { %801 = shalt.err (!%p798_p4)
}
  0x2b   :  { %s802_s23 = scalar_lea.vmem %s25_s24, 32  ;;  %p807_p6 = scmp.lt.s32.totalorder %s25_s24, %s25_s24 }
  0x2c   :  { %p803_p5 = scmp.ne.s32.totalorder %s25_s24, %s802_s23  ;;  %p808_p7 = scmp.lt.s32.totalorder %s802_s23, %s802_s23 }
  0x2e   :  { %p809_p8 = por %p808_p7, %p807_p6 }
  0x30   :  { %p810_p9 = pnand %p809_p8, %p803_p5 }
  0x32   :  { %813 = shalt.err (!%p810_p9)
}
  0x33   :  { %27 = dma.hbm_to_vmem [thread:$0]  %s1075_s0, 32, %s25_s24, [#allocation3]  }
  0x34   :  { %s893_s25 = smov [#allocation7]   ;;  %s894_s27 = smov [#allocation10]  }
  0x35   :  { %s45_s26 = sshll.u32 %s893_s25, 4  ;;  %s73_s28 = sshll.u32 %s894_s27, 4  ;;  %s46_s26 = int_to_ptr.vmem [resolvable:$true] %s45_s26  ;;  %s74_s28 = int_to_ptr.vmem [resolvable:$true] %s73_s28 }
  0x36   :  { %s814_s11 = scalar_lea.hbm %s1078_s3, 2048 }
  0x37   :  { %p815_p10 = scmp.ne.s32.totalorder %s1078_s3, %s814_s11  ;;  %p818_p11 = scmp.lt.u32.totalorder %s814_s11, %s1078_s3 }
  0x39   :  { %p820_p12 = pnand %p818_p11, %p815_p10 }
  0x3b   :  { %823 = shalt.err (!%p820_p12)
}
  0x3c   :  { %s824_s0 = scalar_lea.vmem %s46_s26, 2048  ;;  %p829_p0 = scmp.lt.s32.totalorder %s46_s26, %s46_s26 }
  0x3d   :  { %p825_p13 = scmp.ne.s32.totalorder %s46_s26, %s824_s0  ;;  %p830_p1 = scmp.lt.s32.totalorder %s824_s0, %s824_s0 }
  0x3f   :  { %p831_p2 = por %p830_p1, %p829_p0 }
  0x41   :  { %p832_p3 = pnand %p831_p2, %p825_p13 }
  0x43   :  { %835 = shalt.err (!%p832_p3)
}
  0x44   :  { %51 = dma.hbm_to_vmem [thread:$0]  %s1078_s3, 2048, %s46_s26, [#allocation6], %s891_s10, %s891_s10, %s892_s12  }
  0x45   :  { %s836_s19 = scalar_lea.hbm %s1082_s7, 2048 }
  0x46   :  { %p837_p4 = scmp.ne.s32.totalorder %s1082_s7, %s836_s19  ;;  %p840_p5 = scmp.lt.u32.totalorder %s836_s19, %s1082_s7 }
  0x48   :  { %p842_p6 = pnand %p840_p5, %p837_p4 }
  0x4a   :  { %845 = shalt.err (!%p842_p6)
}
  0x4b   :  { %s846_s22 = scalar_lea.vmem %s74_s28, 2048  ;;  %p851_p8 = scmp.lt.s32.totalorder %s74_s28, %s74_s28 }
  0x4c   :  { %p847_p7 = scmp.ne.s32.totalorder %s74_s28, %s846_s22  ;;  %p852_p9 = scmp.lt.s32.totalorder %s846_s22, %s846_s22 }
  0x4e   :  { %p853_p10 = por %p852_p9, %p851_p8 }
  0x50   :  { %p854_p11 = pnand %p853_p10, %p847_p7 }
  0x52   :  { %857 = shalt.err (!%p854_p11)
}
  0x53   :  { %79 = dma.hbm_to_vmem [thread:$0]  %s1082_s7, 2048, %s74_s28, [#allocation9], %s891_s10, %s891_s10, %s892_s12  }
  0x54   :  { %880 = dma.done.wait [#allocation3], 32  }
  0x55   :  { %881 = vsyncadd [#allocation3], 4294967264 }
  0x56   :  { %882 = dma.done.wait [#allocation6], 2176  }
  0x57   :  { %883 = vsyncadd [#allocation6], 4294965120 }
  0x58   :  { %884 = dma.done.wait [#allocation9], 4096  }
  0x59   :  { %885 = vsyncadd [#allocation9], 4294963200  ;;  %v895_v0 = vmov 0.0   ;;  %vm896_vm0 = vmmov 0   ;;  %v897_v1 = vmov 0.0|0.0   ;;  %vm106_vm1 = vcmask 64512  }
  0x5a   :  { %551 = vmatprep.subr.mxu0 %v895_v0  ;;  %553 = vmatprep.mubr.msk.f32.mxu0 %vm896_vm0, %v895_v0  ;;  %v98_v2 = vld [vmem:[#allocation5] sm:$0xff]  ;;  %v97_v3 = vld [vmem:[#allocation2] sm:$0x3]  ;;  %v181_v4 = vld [vmem:[#allocation7] sm:$0xff]  ;;  %vm462_vm2 = vcmask 1041408   ;;  %vm474_vm3 = vcmask 25600  }
  0x5b   :  { %661 = vmatprep.subr.bf16.mxu1 %v897_v1  ;;  %588 = vmatprep.mubr.msk.f32.mxu1 %vm896_vm0, %v895_v0  ;;  %v182_v5 = vld [vmem:[#allocation7 + $0x8] sm:$0xff]  ;;  %v183_v6 = vld [vmem:[#allocation7 + $0x10] sm:$0xff]  ;;  %v184_v7 = vld [vmem:[#allocation7 + $0x18] sm:$0xff] }
  0x5c   :  { %552 = vmatpush3.msra.mxu0 %v98_v2  ;;  %v662_v8 = vpack.c.bf16 %v182_v5, %v181_v4  ;;  %v665_v9 = vpack.c.bf16 %v184_v7, %v183_v6  ;;  %v185_v10 = vld [vmem:[#allocation7 + $0x20] sm:$0xff]  ;;  %v186_v11 = vld [vmem:[#allocation7 + $0x28] sm:$0xff]  ;;  %v187_v13 = vld [vmem:[#allocation7 + $0x30] sm:$0xff] }
  0x5d   :  { %554 = vmatmul.mubr.msk.f32.vlgmr.msra.gmra.mrb[0].mxu0 %vm106_vm1, %v97_v3  ;;  %685 = vmatprep.subr.bf16.mxu0 %v897_v1  ;;  %v668_v12 = vpack.c.bf16 %v186_v11, %v185_v10  ;;  %v188_v14 = vld [vmem:[#allocation7 + $0x38] sm:$0xff]  ;;  %v189_v16 = vld [vmem:[#allocation7 + $0x40] sm:$0xff]  ;;  %v190_v17 = vld [vmem:[#allocation7 + $0x48] sm:$0xff] }
  0x5e   :  { %623 = vmatprep.mubr.msk.f32.mxu0 %vm896_vm0, %v895_v0  ;;  %663 = vmatpush3.bf16.msra.mxu1 %v662_v8  ;;  %v671_v15 = vpack.c.bf16 %v188_v14, %v187_v13  ;;  %v674_v18 = vpack.c.bf16 %v190_v17, %v189_v16  ;;  %v191_v19 = vld [vmem:[#allocation7 + $0x50] sm:$0xff]  ;;  %v192_v20 = vld [vmem:[#allocation7 + $0x58] sm:$0xff]  ;;  %v193_v22 = vld [vmem:[#allocation7 + $0x60] sm:$0xff] }
  0x5f   :  { %664 = vmatprep.subr.bf16.mxu1 %v897_v1  ;;  %v677_v21 = vpack.c.bf16 %v192_v20, %v191_v19  ;;  %v194_v23 = vld [vmem:[#allocation7 + $0x68] sm:$0xff]  ;;  %v195_v25 = vld [vmem:[#allocation7 + $0x70] sm:$0xff]  ;;  %v196_v26 = vld [vmem:[#allocation7 + $0x78] sm:$0xff] }
  0x60   :  { %v680_v24 = vpack.c.bf16 %v194_v23, %v193_v22  ;;  %v683_v27 = vpack.c.bf16 %v196_v26, %v195_v25  ;;  %v275_v28 = vld [vmem:[#allocation8] sm:$0xff]  ;;  %v276_v29 = vld [vmem:[#allocation8 + $0x8] sm:$0xff]  ;;  %v277_v30 = vld [vmem:[#allocation8 + $0x10] sm:$0xff] }
  0x61   :  { %v686_v31 = vpack.c.bf16 %v276_v29, %v275_v28  ;;  %v278_v32 = vld [vmem:[#allocation8 + $0x18] sm:$0xff]  ;;  %v279_v34 = vld [vmem:[#allocation8 + $0x20] sm:$0xff]  ;;  %v280_v35 = vld [vmem:[#allocation8 + $0x28] sm:$0xff] }
  0x62   :  { %666 = vmatpush3.bf16.msra.mxu1 %v665_v9  ;;  %v689_v33 = vpack.c.bf16 %v278_v32, %v277_v30  ;;  %v692_v36 = vpack.c.bf16 %v280_v35, %v279_v34  ;;  %v281_v37 = vld [vmem:[#allocation8 + $0x30] sm:$0xff]  ;;  %v282_v38 = vld [vmem:[#allocation8 + $0x38] sm:$0xff]  ;;  %v283_v40 = vld [vmem:[#allocation8 + $0x40] sm:$0xff] }
  0x63   :  { %667 = vmatprep.subr.bf16.mxu1 %v897_v1  ;;  %687 = vmatpush3.bf16.msra.mxu0 %v686_v31  ;;  %v695_v39 = vpack.c.bf16 %v282_v38, %v281_v37  ;;  %v284_v41 = vld [vmem:[#allocation8 + $0x48] sm:$0xff]  ;;  %v285_v43 = vld [vmem:[#allocation8 + $0x50] sm:$0xff]  ;;  %v286_v44 = vld [vmem:[#allocation8 + $0x58] sm:$0xff] }
  0x64   :  { %688 = vmatprep.subr.bf16.mxu0 %v897_v1  ;;  %v698_v42 = vpack.c.bf16 %v284_v41, %v283_v40  ;;  %v701_v45 = vpack.c.bf16 %v286_v44, %v285_v43  ;;  %v287_v46 = vld [vmem:[#allocation8 + $0x60] sm:$0xff]  ;;  %v288_v47 = vld [vmem:[#allocation8 + $0x68] sm:$0xff]  ;;  %v493_v49 = vld [vmem:[%s1077_s2] ss:$0 sm:$0xff] }
  0x65   :  { %v704_v48 = vpack.c.bf16 %v288_v47, %v287_v46  ;;  %v289_v54 = vld [vmem:[#allocation8 + $0x70] sm:$0xff]  ;;  %v290_v55 = vld [vmem:[#allocation8 + $0x78] sm:$0xff]  ;;  %v369_v57 = vld [vmem:[#allocation10] sm:$0xff] }
  0x66   :  { %669 = vmatpush3.bf16.msra.mxu1 %v668_v12  ;;  %v707_v56 = vpack.c.bf16 %v290_v55, %v289_v54  ;;  %v370_v58 = vld [vmem:[#allocation10 + $0x8] sm:$0xff]  ;;  %v371_v59 = vld [vmem:[#allocation10 + $0x10] sm:$0xff]  ;;  %v372_v61 = vld [vmem:[#allocation10 + $0x18] sm:$0xff] }
  0x67   :  { %670 = vmatprep.subr.bf16.mxu1 %v897_v1  ;;  %690 = vmatpush3.bf16.msra.mxu0 %v689_v33  ;;  %v710_v60 = vpack.c.bf16 %v370_v58, %v369_v57  ;;  %v713_v62 = vpack.c.bf16 %v372_v61, %v371_v59  ;;  %v373_v63 = vld [vmem:[#allocation10 + $0x20] sm:$0xff]  ;;  %v374_v2 = vld [vmem:[#allocation10 + $0x28] sm:$0xff]  ;;  %v376_v4 = vld [vmem:[#allocation10 + $0x38] sm:$0xff] }
  0x68   :  { %691 = vmatprep.subr.bf16.mxu0 %v897_v1  ;;  %v716_v3 = vpack.c.bf16 %v374_v2, %v373_v63  ;;  %v377_v6 = vld [vmem:[#allocation10 + $0x40] sm:$0xff]  ;;  %v378_v7 = vld [vmem:[#allocation10 + $0x48] sm:$0xff]  ;;  %v379_v9 = vld [vmem:[#allocation10 + $0x50] sm:$0xff] }
  0x69   :  { %v722_v8 = vpack.c.bf16 %v378_v7, %v377_v6  ;;  %v380_v10 = vld [vmem:[#allocation10 + $0x58] sm:$0xff]  ;;  %v381_v12 = vld [vmem:[#allocation10 + $0x60] sm:$0xff]  ;;  %v382_v13 = vld [vmem:[#allocation10 + $0x68] sm:$0xff] }
  0x6a   :  { %672 = vmatpush3.bf16.msra.mxu1 %v671_v15  ;;  %v725_v11 = vpack.c.bf16 %v380_v10, %v379_v9  ;;  %v728_v14 = vpack.c.bf16 %v382_v13, %v381_v12  ;;  %v495_v15 = vld [vmem:[%s1079_s4] ss:$0 sm:$0xff] }
  0x6b   :  { %673 = vmatprep.subr.bf16.mxu1 %v897_v1  ;;  %693 = vmatpush3.bf16.msra.mxu0 %v692_v36  ;;  %v383_v20 = vld [vmem:[#allocation10 + $0x70] sm:$0xff] }
  0x6c   :  { %694 = vmatprep.subr.bf16.mxu0 %v897_v1  ;;  %v496_v23 = vld [vmem:[%s1081_s6] ss:$0 sm:$0xff]  ;;  %s898_s6 = smov [#allocation11]  }
  0x6d   :  { %s482_s29 = sshll.u32 %s898_s6, 4  ;;  %s483_s29 = int_to_ptr.vmem [resolvable:$true] %s482_s29 }
  0x6e   :  { %675 = vmatpush3.bf16.msra.mxu1 %v674_v18  ;;  %p863_p13 = scmp.lt.s32.totalorder %s483_s29, %s483_s29 }
  0x6f   :  { %676 = vmatprep.subr.bf16.mxu1 %v897_v1  ;;  %696 = vmatpush3.bf16.msra.mxu0 %v695_v39 }
  0x70   :  { %697 = vmatprep.subr.bf16.mxu0 %v897_v1 }
  0x72   :  { %678 = vmatpush3.bf16.msra.mxu1 %v677_v21  ;;  %v384_v21 = vld [vmem:[#allocation10 + $0x78] sm:$0xff] }
  0x73   :  { %679 = vmatprep.subr.bf16.mxu1 %v897_v1  ;;  %699 = vmatpush3.bf16.msra.mxu0 %v698_v42  ;;  %v731_v22 = vpack.c.bf16 %v384_v21, %v383_v20 }
  0x74   :  { %700 = vmatprep.subr.bf16.mxu0 %v897_v1 }
  0x76   :  { %681 = vmatpush3.bf16.msra.mxu1 %v680_v24 }
  0x77   :  { %682 = vmatprep.subr.bf16.mxu1 %v897_v1  ;;  %702 = vmatpush3.bf16.msra.mxu0 %v701_v45 }
  0x78   :  { %703 = vmatprep.subr.bf16.mxu0 %v897_v1 }
  0x7a   :  { %684 = vmatpush3.bf16.msra.mxu1 %v683_v27  ;;  %v497_v27 = vld [vmem:[%s1083_s8] ss:$0 sm:$0xff]  ;;  %s858_s8 = scalar_lea.vmem %s483_s29, 32 }
  0x7b   :  { %709 = vmatprep.subr.bf16.mxu1 %v897_v1  ;;  %705 = vmatpush3.bf16.msra.mxu0 %v704_v48  ;;  %p859_p12 = scmp.ne.s32.totalorder %s483_s29, %s858_s8  ;;  %p864_p0 = scmp.lt.s32.totalorder %s858_s8, %s858_s8 }
  0x7c   :  { %706 = vmatprep.subr.bf16.mxu0 %v897_v1 }
  0x7d   :  { %p865_p1 = por %p864_p0, %p863_p13 }
  0x7f   :  { %708 = vmatpush3.bf16.msra.mxu0 %v707_v56  ;;  %p866_p2 = pnand %p865_p1, %p859_p12 }
 0x130   :  { %v176_v50 = vpop.f32.mrb[0].mxu0 }
 0x131   :  { %v177_v51 = vadd.f32 %v493_v49, %v176_v50  ;;  %v555_v52 = vpop.f32.mrb[1].mxu0 }
 0x133   :  { %v180_v53 = vmax.f32 %v177_v51, 0.0 }
 0x135   :  { %589 = vmatmul.mubr.f32.vlgmr.msra.gmra.mrb[0].mxu1 %v180_v53 }
 0x136   :  { %658 = vmatprep.mubr.msk.f32.mxu1 %vm896_vm0, %v895_v0  ;;  %711 = vmatpush3.bf16.msra.mxu1 %v710_v60  ;;  %v375_v0 = vld [vmem:[#allocation10 + $0x30] sm:$0xff] }
 0x137   :  { %712 = vmatprep.subr.bf16.mxu1 %v897_v1  ;;  %v719_v5 = vpack.c.bf16 %v376_v4, %v375_v0 }
 0x13a   :  { %714 = vmatpush3.bf16.msra.mxu1 %v713_v62 }
 0x13b   :  { %715 = vmatprep.subr.bf16.mxu1 %v897_v1 }
 0x13e   :  { %717 = vmatpush3.bf16.msra.mxu1 %v716_v3 }
 0x13f   :  { %718 = vmatprep.subr.bf16.mxu1 %v897_v1 }
 0x142   :  { %720 = vmatpush3.bf16.msra.mxu1 %v719_v5 }
 0x143   :  { %721 = vmatprep.subr.bf16.mxu1 %v897_v1 }
 0x146   :  { %723 = vmatpush3.bf16.msra.mxu1 %v722_v8 }
 0x147   :  { %724 = vmatprep.subr.bf16.mxu1 %v897_v1 }
 0x14a   :  { %726 = vmatpush3.bf16.msra.mxu1 %v725_v11 }
 0x14b   :  { %727 = vmatprep.subr.bf16.mxu1 %v897_v1 }
 0x14e   :  { %729 = vmatpush3.bf16.msra.mxu1 %v728_v14 }
 0x14f   :  { %730 = vmatprep.subr.bf16.mxu1 %v897_v1 }
 0x152   :  { %732 = vmatpush3.bf16.msra.mxu1 %v731_v22 }
 0x208   :  { %v270_v16 = vpop.f32.mrb[0].mxu1 }
 0x209   :  { %v271_v17 = vadd.f32 %v495_v15, %v270_v16  ;;  %v590_v18 = vpop.f32.mrb[1].mxu1 }
 0x20b   :  { %v274_v19 = vmax.f32 %v271_v17, 0.0 }
 0x20d   :  { %624 = vmatmul.mubr.f32.vlgmr.msra.gmra.mrb[2].mxu0 %v274_v19 }
 0x2e0   :  { %v364_v24 = vpop.f32.mrb[2].mxu0 }
 0x2e1   :  { %v365_v25 = vadd.f32 %v496_v23, %v364_v24  ;;  %v625_v1 = vpop.f32.mrb[3].mxu0 }
 0x2e3   :  { %v368_v26 = vmax.f32 %v365_v25, 0.0 }
 0x2e5   :  { %659 = vmatmul.mubr.f32.vlgmr.msra.gmra.mrb[2].mxu1 %v368_v26 }
 0x3b8   :  { %v458_v28 = vpop.f32.mrb[2].mxu1 }
 0x3b9   :  { %v459_v29 = vadd.f32 %v497_v27, %v458_v28  ;;  %v660_v30 = vpop.f32.mrb[3].mxu1 }
 0x3bb   :  { %v463_v31 = vsel %vm462_vm2, %v459_v29, -inf }
 0x3bc   :  { %464 = vmax.xlane.f32.xlu0 %v463_v31 }
 0x449   :  { %v465_v32 = vpop.xlane.xlu0 %464 }
 0x44a   :  { %v466_v33 = vsub.f32 %v459_v29, %v465_v32 }
 0x44c   :  { %v467_v34 = vmul.f32 1.442695, %v466_v33 }
 0x44e   :  { %744 = vpow2.f32 %v467_v34 }
 0x458   :  { %v745_v35 = vpop.eup %744 }
 0x459   :  { %v469_v36 = vsel %vm462_vm2, %v745_v35, 0.0 }
 0x45a   :  { %470 = vadd.xlane.f32.xlu0 %v469_v36 }
 0x4e7   :  { %v471_v37 = vpop.xlane.xlu0 %470 }
 0x4e8   :  { %746 = vrcp.f32 %v471_v37 }
 0x4f2   :  { %v747_v38 = vpop.eup %746 }
 0x4f3   :  { %v473_v39 = vmul.f32 %v747_v38, %v745_v35 }
 0x4f5   :  { %475 = vst.msk [vmem:[#allocation11] sm:$0x3] %vm474_vm3, %v473_v39 }
 0x4f6   :  { %869 = shalt.err (!%p866_p2)
}
 0x4f7   :  { %s870_s1 = scalar_lea.hbm %s1084_s9, 32 }
 0x4f8   :  { %p871_p3 = scmp.ne.s32.totalorder %s1084_s9, %s870_s1  ;;  %p874_p4 = scmp.lt.u32.totalorder %s870_s1, %s1084_s9 }
 0x4fa   :  { %p876_p5 = pnand %p874_p4, %p871_p3 }
 0x4fc   :  { %879 = shalt.err (!%p876_p5)
}
 0x4fd   :  { %485 = dma.vmem_to_hbm [thread:$0]  %s483_s29, 32, %s1084_s9, [#allocation4]  }
 0x4fe   :  { %886 = dma.done.wait [#allocation4], 32  }
 0x4ff   :  { %887 = vsyncadd [#allocation4], 4294967264 }
 0x500   :  { %489 = vsyncpa [#allocation3], 1 }
 0x501   :  { %490 = vsyncpa [#allocation6], 1 }
 0x502   :  { %491 = vsyncpa [#allocation9], 1 }
 0x503   :  { %492 = vsyncpa [#allocation4], 1 }

</bundles_post_ra>
